<compile_context>
chip_gen: v6e
topology: v6e:2x2x1
jax: 0.10.0
libtpu: 0.0.40
codegen_flags: <defaults>
</compile_context>

<pallas_src>
import functools
import math

import jax
import jax.numpy as jnp
from jax.experimental import pallas as pl
from jax.experimental.pallas import tpu as pltpu

FEAT_DIM = 32        # module default 512, kept small per instructions
NUM_CLASS = 256      # module default 10575, kept small per instructions
BATCH = 8
S = 64.0

COS_EPS = 1e-5
CLAMP_LO = 1e-5
CLAMP_HI = 3.14159
PI = math.pi
COS_LO = math.cos(CLAMP_LO)
COS_HI = math.cos(CLAMP_HI)

# Invariant behind the non-label fast path: once cc is clipped to +-(1-COS_EPS),
# theta = acos(cc) already lies inside [CLAMP_LO, CLAMP_HI], so non-label
# columns never hit the theta clamp and their output is exactly s * cc.
# These asserts make a silent break impossible if the constants are retuned.
assert math.acos(1.0 - COS_EPS) >= CLAMP_LO, "non-label fast path invariant broken"
assert math.acos(-1.0 + COS_EPS) <= CLAMP_HI, "non-label fast path invariant broken"


def _adaptive_arcface_kernel(labels_ref, m_ref, feats_ref, w_ref, out_ref, *, s, tn):
    j = pl.program_id(0)                              # class-tile index

    x = feats_ref[...].astype(jnp.float32)            # (tb, D)
    w = w_ref[...].astype(jnp.float32)                # (D, tn)  f32/bf16 storage ok

    # ---- per-row quantities: (tb, 1) each (tiny; recomputed per tile so both
    #      "parallel" axes stay correct when sharded across cores) ------------
    # 1 / max(||x_i||, 1e-12)  ==  rsqrt(max(||x_i||^2, 1e-24))
    x_inv = jax.lax.rsqrt(jnp.maximum(jnp.sum(x * x, axis=1, keepdims=True), 1e-24))

    m = m_ref[...]                                    # (tb, 1) f32
    cos_m = jnp.cos(m)
    sin_m = jnp.sin(m)

    # clamp(theta + m, LO, HI) folded into per-row thresholds on cc (the clipped
    # label-column cosine), via cos monotonicity on [0, pi]:
    #   hit HI  <=>  cc < hi_thr      hit LO  <=>  cc > lo_thr
    # Edge branches: x_hi <= 0 (m >= HI) -> always HI; x_hi >= pi -> never HI;
    #                x_lo <= 0 (m >  LO-ish) -> never LO; x_lo >= pi -> always LO.
    x_hi = CLAMP_HI - m
    x_lo = CLAMP_LO - m
    hi_thr = jnp.where(x_hi <= 0.0, jnp.inf,
                       jnp.where(x_hi >= PI, -jnp.inf, jnp.cos(x_hi)))
    lo_thr = jnp.where(x_lo <= 0.0, jnp.inf,
                       jnp.where(x_lo >= PI, -jnp.inf, jnp.cos(x_lo)))

    # ---- column norms via ones-row matmul (MXU), not a VPU sublane reduce ----
    d = x.shape[1]
    w_sq_sum = jnp.dot(jnp.ones((1, d), jnp.float32), w * w,
                       preferred_element_type=jnp.float32)          # (1, tn)
    w_inv = jax.lax.rsqrt(jnp.maximum(w_sq_sum, 1e-24))

    # ---- cosine over the class tile: scale AFTER the matmul -----------------
    dot_raw = jnp.dot(x, w, preferred_element_type=jnp.float32)     # (tb, tn)
    cos_theta = dot_raw * x_inv * w_inv
    cc = jnp.clip(cos_theta, -1.0 + COS_EPS, 1.0 - COS_EPS)         # (tb, tn)

    # ---- margin correction, restricted to the label column of each row ------
    # Fold the tile offset into the scalar side (no full-tile int32 add).
    tb = cc.shape[0]
    local_label = labels_ref[...] - j * tn                          # (tb, 1)
    is_label = jax.lax.broadcasted_iota(jnp.int32, (tb, tn), 1) == local_label

    # cc at each row's label column (0 if this row's label is not in this tile,
    # in which case the corrected value is never selected).
    cc_lab = jnp.sum(jnp.where(is_label, cc, 0.0), axis=1, keepdims=True)   # (tb, 1)

    sin_lab = jnp.sqrt(jnp.maximum(1.0 - cc_lab * cc_lab, 0.0))
    cos_tm = cc_lab * cos_m - sin_lab * sin_m        # cos(acos(cc_lab) + m)
    corrected = jnp.where(cc_lab < hi_thr, jnp.float32(COS_HI),
                          jnp.where(cc_lab > lo_thr, jnp.float32(COS_LO), cos_tm))

    # Non-label columns: theta stays inside [LO, HI] (cc is pre-clipped, see the
    # module-level asserts), so the reference output is exactly s * cc.
    out_ref[...] = (s * jnp.where(is_label, corrected, cc)).astype(out_ref.dtype)


def _round_up(x, k):
    return -(-x // k) * k


def _pick_class_tile(C, cap=2048):
    """Lane-dense (multiple of 128) class tile, <= cap.  When more than one tile
    is needed, the tile count is made even so v7x's two TensorCores stay
    balanced under dimension_semantics=('parallel', ...)."""
    c128 = _round_up(C, 128)
    if c128 <= cap:
        return c128                       # single tile (demo size)
    n_tiles = -(-c128 // cap)
    if n_tiles % 2:
        n_tiles += 1                      # v7x 2-TC load balance
    return _round_up(-(-c128 // n_tiles), 128)


def adaptive_arcface(feats, labels, m, w, *, s=S, block_c=None, max_block_b=128):
    """feats: (B, D) f32, labels: (B,) int, m: (B,) f32, w: (D, C) f32|bf16 -> (B, C) f32."""
    B, D = feats.shape
    Dw, C = w.shape
    assert D == Dw

    if block_c is None:
        block_c = _pick_class_tile(C)
    Cp = _round_up(C, block_c)

    # Batch M-tiles: sublane-aligned, capped (128 rows feeds the MXU well on
    # v5e/v6e/v7x while keeping the output tile small).
    block_b = min(_round_up(B, 8), max_block_b)
    Bp = _round_up(B, block_b)

    w_p = jnp.pad(w, ((0, 0), (0, Cp - C))) if Cp != C else w
    feats_p = jnp.pad(feats, ((0, Bp - B), (0, 0))) if Bp != B else feats
    labels2 = jnp.pad(labels.astype(jnp.int32), (0, Bp - B)).reshape(Bp, 1)
    m2 = jnp.pad(m.astype(jnp.float32), (0, Bp - B)).reshape(Bp, 1)

    kernel = functools.partial(_adaptive_arcface_kernel, s=float(s), tn=block_c)

    out = pl.pallas_call(
        kernel,
        out_shape=jax.ShapeDtypeStruct((Bp, Cp), jnp.float32),
        grid_spec=pltpu.PrefetchScalarGridSpec(
            num_scalar_prefetch=0,
            # Class axis outer, batch axis inner (fastest): w's block index only
            # depends on j, so the w tile stays resident in VMEM across all
            # batch tiles -> w is streamed from HBM exactly once.
            grid=(Cp // block_c, Bp // block_b),
            in_specs=[
                pl.BlockSpec((block_b, 1), lambda j, i: (i, 0)),        # labels
                pl.BlockSpec((block_b, 1), lambda j, i: (i, 0)),        # m
                pl.BlockSpec((block_b, D), lambda j, i: (i, 0)),        # feats
                pl.BlockSpec((D, block_c), lambda j, i: (0, j)),        # w tile
            ],
            out_specs=pl.BlockSpec((block_b, block_c), lambda j, i: (i, j)),
        ),
        compiler_params=pltpu.CompilerParams(
            dimension_semantics=("parallel", "parallel"),
            # (512, 2048) f32 w tile x2 buffers = 8 MiB + out/feats tiles; 32 MiB
            # scoped budget is safe on v7x (64 MiB physical) and ample on v5e/v6e.
            vmem_limit_bytes=32 * 1024 * 1024,
        ),
    )(labels2, m2, feats_p, w_p)

    if Bp != B or Cp != C:
        out = out[:B, :C]
    return out


def reference_jax(feats, labels, m, w, s=S):
    """Pure-JAX transcription of the PyTorch forward (for sanity check)."""
    wn = w / jnp.maximum(jnp.linalg.norm(w, axis=0, keepdims=True), 1e-12)
    fn = feats / jnp.maximum(jnp.linalg.norm(feats, axis=1, keepdims=True), 1e-12)
    cos_theta = fn @ wn
    theta_m = jnp.arccos(jnp.clip(cos_theta, -1.0 + 1e-5, 1.0 - 1e-5))
    theta_m = theta_m.at[jnp.arange(feats.shape[0]), labels].add(m)
    theta_m = jnp.clip(theta_m, 1e-5, 3.14159)
    d_theta = jnp.cos(theta_m) - cos_theta
    return s * (cos_theta + d_theta)


if __name__ == "__main__":
    key = jax.random.PRNGKey(0)
    k_w, k_f, k_l, k_m = jax.random.split(key, 4)

    # Deterministic parameter init: xavier_normal_ for w of shape (feat_dim, num_class)
    xavier_std = math.sqrt(2.0 / (FEAT_DIM + NUM_CLASS))
    w = jax.random.normal(k_w, (FEAT_DIM, NUM_CLASS), dtype=jnp.float32) * xavier_std

    feats = jax.random.normal(k_f, (BATCH, FEAT_DIM), dtype=jnp.float32)
    labels = jax.random.randint(k_l, (BATCH,), 0, NUM_CLASS, dtype=jnp.int32)
    m = jax.random.uniform(k_m, (BATCH,), dtype=jnp.float32, minval=0.0, maxval=0.5)

    logits = adaptive_arcface(feats, labels, m, w)
    logits = jax.block_until_ready(logits)

    ref = reference_jax(feats, labels, m, w)
    assert logits.shape == (BATCH, NUM_CLASS)
    assert jnp.all(jnp.isfinite(logits))
    assert jnp.allclose(logits, ref, atol=1e-2), float(jnp.max(jnp.abs(logits - ref)))

    print("KERNEL_OK")
</pallas_src>

<mosaic_0001>
module attributes {stable_mosaic.version = 11 : i64} {
  func.func @_adaptive_arcface_kernel(%arg0: i32, %arg1: i32, %arg2: memref<8x1xi32, #tpu.memory_space<vmem>>, %arg3: memref<8x1xf32, #tpu.memory_space<vmem>>, %arg4: memref<8x32xf32, #tpu.memory_space<vmem>>, %arg5: memref<32x256xf32, #tpu.memory_space<vmem>>, %arg6: memref<8x256xf32, #tpu.memory_space<vmem>>) attributes {dimension_semantics = [#tpu.dimension_semantics<parallel>, #tpu.dimension_semantics<parallel>], iteration_bounds = array<i64: 1, 1>, scalar_prefetch = 0 : i64, scratch_operands = 0 : i64, tpu.core_type = #tpu.core_type<tc>, window_params = [{transform_indices = @transform_0, window_bounds = array<i64: 8, 1>}, {transform_indices = @transform_1, window_bounds = array<i64: 8, 1>}, {transform_indices = @transform_2, window_bounds = array<i64: 8, 32>}, {transform_indices = @transform_3, window_bounds = array<i64: 32, 256>}, {transform_indices = @transform_4, window_bounds = array<i64: 8, 256>}]} {
    %c0 = arith.constant 0 : index
    %c0_0 = arith.constant 0 : index
    %0 = vector.load %arg4[%c0, %c0_0] : memref<8x32xf32, #tpu.memory_space<vmem>>, vector<8x32xf32>
    %c0_1 = arith.constant 0 : index
    %c0_2 = arith.constant 0 : index
    %1 = vector.load %arg5[%c0_1, %c0_2] : memref<32x256xf32, #tpu.memory_space<vmem>>, vector<32x256xf32>
    %2 = arith.mulf %0, %0 : vector<8x32xf32>
    %cst = arith.constant dense<0.000000e+00> : vector<8xf32>
    %3 = vector.multi_reduction <add>, %2, %cst [1] : vector<8x32xf32> to vector<8xf32>
    %4 = vector.shape_cast %3 : vector<8xf32> to vector<8x1xf32>
    %cst_3 = arith.constant 1.000000e-24 : f32
    %5 = vector.broadcast %cst_3 : f32 to vector<8x1xf32>
    %6 = arith.maximumf %4, %5 : vector<8x1xf32>
    %7 = math.rsqrt %6 : vector<8x1xf32>
    %c0_4 = arith.constant 0 : index
    %c0_5 = arith.constant 0 : index
    %8 = vector.load %arg3[%c0_4, %c0_5] : memref<8x1xf32, #tpu.memory_space<vmem>>, vector<8x1xf32>
    %9 = math.cos %8 : vector<8x1xf32>
    %10 = math.sin %8 : vector<8x1xf32>
    %cst_6 = arith.constant 3.141590e+00 : f32
    %11 = vector.broadcast %cst_6 : f32 to vector<8x1xf32>
    %12 = arith.subf %11, %8 : vector<8x1xf32>
    %cst_7 = arith.constant 9.99999974E-6 : f32
    %13 = vector.broadcast %cst_7 : f32 to vector<8x1xf32>
    %14 = arith.subf %13, %8 : vector<8x1xf32>
    %cst_8 = arith.constant 0.000000e+00 : f32
    %15 = vector.broadcast %cst_8 : f32 to vector<8x1xf32>
    %16 = arith.cmpf ole, %12, %15 : vector<8x1xf32>
    %cst_9 = arith.constant 3.14159274 : f32
    %17 = vector.broadcast %cst_9 : f32 to vector<8x1xf32>
    %18 = arith.cmpf oge, %12, %17 : vector<8x1xf32>
    %19 = math.cos %12 : vector<8x1xf32>
    %cst_10 = arith.constant 0xFF800000 : f32
    %20 = vector.broadcast %cst_10 : f32 to vector<8x1xf32>
    %21 = arith.select %18, %20, %19 : vector<8x1xi1>, vector<8x1xf32>
    %cst_11 = arith.constant 0x7F800000 : f32
    %22 = vector.broadcast %cst_11 : f32 to vector<8x1xf32>
    %23 = arith.select %16, %22, %21 : vector<8x1xi1>, vector<8x1xf32>
    %cst_12 = arith.constant 0.000000e+00 : f32
    %24 = vector.broadcast %cst_12 : f32 to vector<8x1xf32>
    %25 = arith.cmpf ole, %14, %24 : vector<8x1xf32>
    %cst_13 = arith.constant 3.14159274 : f32
    %26 = vector.broadcast %cst_13 : f32 to vector<8x1xf32>
    %27 = arith.cmpf oge, %14, %26 : vector<8x1xf32>
    %28 = math.cos %14 : vector<8x1xf32>
    %cst_14 = arith.constant 0xFF800000 : f32
    %29 = vector.broadcast %cst_14 : f32 to vector<8x1xf32>
    %30 = arith.select %27, %29, %28 : vector<8x1xi1>, vector<8x1xf32>
    %cst_15 = arith.constant 0x7F800000 : f32
    %31 = vector.broadcast %cst_15 : f32 to vector<8x1xf32>
    %32 = arith.select %25, %31, %30 : vector<8x1xi1>, vector<8x1xf32>
    %cst_16 = arith.constant 1.000000e+00 : f32
    %33 = vector.broadcast %cst_16 : f32 to vector<1x32xf32>
    %34 = arith.mulf %1, %1 : vector<32x256xf32>
    %cst_17 = arith.constant dense<0.000000e+00> : vector<1x256xf32>
    %35 = tpu.matmul %33, %34, %cst_17 {dimension_numbers = #tpu.dot_dimension_numbers<[1], [0], [0], [1], [0, 0, 1, 1], [], []>} : vector<1x32xf32>, vector<32x256xf32>, vector<1x256xf32> -> vector<1x256xf32>
    %cst_18 = arith.constant 1.000000e-24 : f32
    %36 = vector.broadcast %cst_18 : f32 to vector<1x256xf32>
    %37 = arith.maximumf %35, %36 : vector<1x256xf32>
    %38 = math.rsqrt %37 : vector<1x256xf32>
    %cst_19 = arith.constant dense<0.000000e+00> : vector<8x256xf32>
    %39 = tpu.matmul %0, %1, %cst_19 {dimension_numbers = #tpu.dot_dimension_numbers<[1], [0], [0], [1], [0, 0, 1, 1], [], []>} : vector<8x32xf32>, vector<32x256xf32>, vector<8x256xf32> -> vector<8x256xf32>
    %40 = vector.broadcast %7 : vector<8x1xf32> to vector<8x256xf32>
    %41 = arith.mulf %39, %40 : vector<8x256xf32>
    %42 = vector.broadcast %38 : vector<1x256xf32> to vector<8x256xf32>
    %43 = arith.mulf %41, %42 : vector<8x256xf32>
    %cst_20 = arith.constant -0.999989986 : f32
    %cst_21 = arith.constant 0.999989986 : f32
    %44 = vector.broadcast %cst_20 : f32 to vector<8x256xf32>
    %45 = arith.maximumf %44, %43 : vector<8x256xf32>
    %46 = vector.broadcast %cst_21 : f32 to vector<8x256xf32>
    %47 = arith.minimumf %46, %45 : vector<8x256xf32>
    %c0_22 = arith.constant 0 : index
    %c0_23 = arith.constant 0 : index
    %48 = vector.load %arg2[%c0_22, %c0_23] : memref<8x1xi32, #tpu.memory_space<vmem>>, vector<8x1xi32>
    %c256_i32 = arith.constant 256 : i32
    %49 = arith.muli %arg0, %c256_i32 : i32
    %50 = vector.broadcast %49 : i32 to vector<8x1xi32>
    %51 = arith.subi %48, %50 : vector<8x1xi32>
    %52 = tpu.iota {dimensions = array<i32: 1>} : vector<8x256xi32>
    %53 = vector.broadcast %51 : vector<8x1xi32> to vector<8x256xi32>
    %54 = arith.cmpi eq, %52, %53 : vector<8x256xi32>
    %cst_24 = arith.constant 0.000000e+00 : f32
    %55 = vector.broadcast %cst_24 : f32 to vector<8x256xf32>
    %56 = arith.select %54, %47, %55 : vector<8x256xi1>, vector<8x256xf32>
    %cst_25 = arith.constant dense<0.000000e+00> : vector<8xf32>
    %57 = vector.multi_reduction <add>, %56, %cst_25 [1] : vector<8x256xf32> to vector<8xf32>
    %58 = vector.shape_cast %57 : vector<8xf32> to vector<8x1xf32>
    %59 = arith.mulf %58, %58 : vector<8x1xf32>
    %cst_26 = arith.constant 1.000000e+00 : f32
    %60 = vector.broadcast %cst_26 : f32 to vector<8x1xf32>
    %61 = arith.subf %60, %59 : vector<8x1xf32>
    %cst_27 = arith.constant 0.000000e+00 : f32
    %62 = vector.broadcast %cst_27 : f32 to vector<8x1xf32>
    %63 = arith.maximumf %61, %62 : vector<8x1xf32>
    %64 = math.sqrt %63 : vector<8x1xf32>
    %65 = arith.mulf %58, %9 : vector<8x1xf32>
    %66 = arith.mulf %64, %10 : vector<8x1xf32>
    %67 = arith.subf %65, %66 : vector<8x1xf32>
    %68 = arith.cmpf olt, %58, %23 : vector<8x1xf32>
    %69 = arith.cmpf ogt, %58, %32 : vector<8x1xf32>
    %cst_28 = arith.constant 1.000000e+00 : f32
    %70 = vector.broadcast %cst_28 : f32 to vector<8x1xf32>
    %71 = arith.select %69, %70, %67 : vector<8x1xi1>, vector<8x1xf32>
    %cst_29 = arith.constant -1.000000e+00 : f32
    %72 = vector.broadcast %cst_29 : f32 to vector<8x1xf32>
    %73 = arith.select %68, %72, %71 : vector<8x1xi1>, vector<8x1xf32>
    %74 = vector.shape_cast %73 : vector<8x1xf32> to vector<8x1xf32>
    %75 = vector.broadcast %74 : vector<8x1xf32> to vector<8x256xf32>
    %76 = arith.select %54, %75, %47 : vector<8x256xi1>, vector<8x256xf32>
    %cst_30 = arith.constant 6.400000e+01 : f32
    %77 = vector.broadcast %cst_30 : f32 to vector<8x256xf32>
    %78 = arith.mulf %77, %76 : vector<8x256xf32>
    %c0_31 = arith.constant 0 : index
    %c0_32 = arith.constant 0 : index
    %79 = vector.load %arg6[%c0_31, %c0_32] : memref<8x256xf32, #tpu.memory_space<vmem>>, vector<8x256xf32>
    tpu.vector_store %arg6[%c0_31, %c0_32], %78 {strides = array<i32>} : memref<8x256xf32, #tpu.memory_space<vmem>>, vector<8x256xf32>,
    return
  }
  func.func @transform_0(%arg0: i32, %arg1: i32) -> (i32, i32) {
    %c0_i32 = arith.constant 0 : i32
    %c0_i32_0 = arith.constant 0 : i32
    return %arg1, %c0_i32 : i32, i32
  }
  func.func @transform_1(%arg0: i32, %arg1: i32) -> (i32, i32) {
    %c0_i32 = arith.constant 0 : i32
    %c0_i32_0 = arith.constant 0 : i32
    return %arg1, %c0_i32 : i32, i32
  }
  func.func @transform_2(%arg0: i32, %arg1: i32) -> (i32, i32) {
    %c0_i32 = arith.constant 0 : i32
    %c0_i32_0 = arith.constant 0 : i32
    return %arg1, %c0_i32 : i32, i32
  }
  func.func @transform_3(%arg0: i32, %arg1: i32) -> (i32, i32) {
    %c0_i32 = arith.constant 0 : i32
    %c0_i32_0 = arith.constant 0 : i32
    return %c0_i32, %arg0 : i32, i32
  }
  func.func @transform_4(%arg0: i32, %arg1: i32) -> (i32, i32) {
    %c0_i32 = arith.constant 0 : i32
    return %arg1, %arg0 : i32, i32
  }
}

</mosaic_0001>

<bundles_post_ra>
// kernel: tpu_custom_call.1
= control target key start
LH: loop header
LB: loop body
LE: loop exit
PB: predicated region body
PF: predicated region fallthrough
CT: control target
= control target key end

     0   :  { %9 = vsyncpa [#allocation3], 0  ;;  %s1188_s0 = inlined_call_operand.vmem [shape: s32[8,1], index: 0, kind: input, shape index: {}]   ;;  %s1189_s1 = inlined_call_operand.vmem [shape: f32[8,1], index: 1, kind: input, shape index: {}]   ;;  %s1190_s2 = inlined_call_operand.vmem [shape: f32[8,32], index: 2, kind: input, shape index: {}]   ;;  %s1191_s3 = inlined_call_operand.hbm [shape: f32[32,256], index: 3, kind: input, shape index: {}]   ;;  %s1192_s4 = inlined_call_operand.hbm [shape: f32[8,256], index: 4, kind: output, shape index: {}]  }
   0x1   :  { %10 = vsyncpa [#allocation4], 0  ;;  %s819_s15 = smov [#allocation2]  }
   0x2   :  { %s22_s16 = sshll.u32 %s819_s15, 4  ;;  %s23_s16 = int_to_ptr.vmem [resolvable:$true] %s22_s16 }
   0x3   :  { %s783_s17 = scalar_lea.vmem %s23_s16, 1024  ;;  %p788_p1 = scmp.lt.s32.totalorder %s23_s16, %s23_s16 }
   0x4   :  { %p784_p0 = scmp.ne.s32.totalorder %s23_s16, %s783_s17  ;;  %p789_p2 = scmp.lt.s32.totalorder %s783_s17, %s783_s17 }
   0x6   :  { %p790_p3 = por %p789_p2, %p788_p1 }
   0x8   :  { %p791_p4 = pnand %p790_p3, %p784_p0 }
   0xa   :  { %794 = shalt.err (!%p791_p4)
}
   0xb   :  { %s820_s18 = smov 256   ;;  %s821_s19 = smov 16  }
   0xc   :  { %28 = dma.hbm_to_vmem [thread:$0]  %s1191_s3, 1024, %s23_s16, [#allocation3], %s820_s18, %s820_s18, %s821_s19  }
   0xd   :  { %815 = dma.done.wait [#allocation3], 1024  }
   0xe   :  { %816 = vsyncadd [#allocation3], 4294966272  ;;  %v822_v0 = vmov 0.0   ;;  %v823_v1 = vmov 0   ;;  %v40_v2 = vld [vmem:[#allocation2 + $0x38] sm:$0xff]  ;;  %v39_v3 = vld [vmem:[#allocation2 + $0x30] sm:$0xff]  ;;  %v634_v30 = vlaneseq }
   0xf   :  { %547 = vmatprep.mubr.f32.mxu0 %v822_v0  ;;  %625 = vmatprep.mubr.f32.mxu1 %v822_v0  ;;  %v38_v4 = vld [vmem:[#allocation2 + $0x28] sm:$0xff]  ;;  %v479_v5 = vmul.f32 %v40_v2, %v40_v2  ;;  %v478_v6 = vmul.f32 %v39_v3, %v39_v3  ;;  %v37_v8 = vld [vmem:[#allocation2 + $0x20] sm:$0xff]  ;;  %v36_v9 = vld [vmem:[#allocation2 + $0x18] sm:$0xff]  ;;  %vm42_vm0 = vcmask 261120   ;;  %v824_v21 = vmov 1.0  }
  0x10   :  { %753 = vset.pattern.permute.xlu0 %v823_v1  ;;  %754 = vset.pattern.permute.xlu1 %v823_v1  ;;  %v477_v7 = vmul.f32 %v38_v4, %v38_v4  ;;  %v35_v10 = vld [vmem:[#allocation2 + $0x10] sm:$0xff]  ;;  %v476_v11 = vmul.f32 %v37_v8, %v37_v8  ;;  %v34_v12 = vld [vmem:[#allocation2 + $0x8] sm:$0xff]  ;;  %v32_v13 = vld [vmem:[%s1190_s2] sm:$0xff]  ;;  %v475_v14 = vmul.f32 %v36_v9, %v36_v9  ;;  %v635_v32 = vshrl.u32 %v634_v30, 7 }
  0x11   :  { %585 = vmatprep.subr.mxu1 %v40_v2  ;;  %507 = vmatprep.subr.mxu0 %v479_v5  ;;  %v33_v15 = vld [vmem:[#allocation2] sm:$0xff]  ;;  %v41_v16 = vmul.f32 %v32_v13, %v32_v13  ;;  %v474_v17 = vmul.f32 %v35_v10, %v35_v10  ;;  %v473_v18 = vmul.f32 %v34_v12, %v34_v12  ;;  %v875_v39 = vand.u32 127, %v634_v30 }
  0x12   :  { %586 = vmatpush1.msra.mxu1 %v39_v3  ;;  %508 = vmatpush1.msra.mxu0 %v478_v6  ;;  %v472_v19 = vmul.f32 %v33_v15, %v33_v15  ;;  %v648_v22 = vld [vmem:[%s1188_s0] sm:$0xff]  ;;  %v636_v36 = vsub.s32 0, %v635_v32  ;;  %v825_v6 = vmov 920167782   ;;  %s831_s0 = smov [#allocation5]  }
  0x13   :  { %587 = vmatprep.subr.mxu1 %v38_v4  ;;  %509 = vmatprep.subr.mxu0 %v477_v7  ;;  %v43_v20 = vsel %vm42_vm0, %v41_v16, 0.0  ;;  %v869_v29 = vld [vmem:[%s1189_s1] sm:$0xff]  ;;  %v882_v48 = vadd.s32 128, %v875_v39  ;;  %s699_s1 = sshll.u32 %s831_s0, 4  ;;  %s700_s1 = int_to_ptr.vmem [resolvable:$true] %s699_s1 }
  0x14   :  { %588 = vmatpush1.msra.mxu1 %v37_v8  ;;  %510 = vmatpush1.msra.mxu0 %v476_v11  ;;  %v52_v31 = vand.u32 2139095040, %v869_v29  ;;  %v873_v38 = vsub.f32 3.14159, %v869_v29  ;;  %v878_v41 = vsub.f32 1e-05, %v869_v29  ;;  %s795_s26 = scalar_lea.vmem %s700_s1, 256  ;;  %p800_p6 = scmp.lt.s32.totalorder %s700_s1, %s700_s1 }
  0x15   :  { %589 = vmatprep.subr.mxu1 %v36_v9  ;;  %511 = vmatprep.subr.mxu0 %v475_v14  ;;  %v49_v5 = vand.u32 2147483647, %v869_v29  ;;  %v826_v8 = vmov 1326507024   ;;  %p796_p5 = scmp.ne.s32.totalorder %s700_s1, %s795_s26  ;;  %p801_p7 = scmp.lt.s32.totalorder %s795_s26, %s795_s26 }
  0x16   :  { %590 = vmatpush1.msra.mxu1 %v35_v10  ;;  %512 = vmatpush1.msra.mxu0 %v474_v17  ;;  %v53_v33 = vshrl.u32 %v52_v31, 23  ;;  %v263_v46 = vand.u32 2139095040, %v873_v38  ;;  %v370_v53 = vand.u32 2139095040, %v878_v41 }
  0x17   :  { %591 = vmatprep.subr.mxu1 %v34_v12  ;;  %513 = vmatprep.subr.mxu0 %v473_v18  ;;  %v56_v10 = vand.u32 8388607, %v49_v5  ;;  %v827_v12 = vmov 683565275   ;;  %v829_v18 = vmov 2131351028   ;;  %p802_p8 = por %p801_p7, %p800_p6 }
  0x18   :  { %592 = vmatpush1.msra.mxu1 %v33_v15  ;;  %514 = vmatpush1.msra.mxu0 %v472_v19  ;;  %v708_v37 = vadd.s32 4294967169, %v53_v33  ;;  %v264_v56 = vshrl.u32 %v263_v46, 23  ;;  %v371_v58 = vshrl.u32 %v370_v53, 23  ;;  %v828_v15 = vmov 2475754826  }
  0x19   :  { %725 = vmatmul.mubr.msk.f32.vlgmr.msra.gmra.mxu1 %vm42_vm0, %v32_v13  ;;  %44 = vadd.xlane.f32.xlu0 %v43_v20  ;;  %p803_p9 = pnand %p802_p8, %p796_p5 }
  0x1a   :  { %724 = vmatmul.mubr.msk.f32.vlgmr.msra.gmra.mxu0 %vm42_vm0, %v824_v21  ;;  %v59_v45 = vadd.s32 1, %v708_v37  ;;  %v716_v62 = vadd.s32 4294967169, %v264_v56  ;;  %v720_v1 = vadd.s32 4294967169, %v371_v58  ;;  %v830_v21 = vmov 2102212464  }
  0x1c   :  { %vm60_vm1 = vcmp.gt.s32.totalorder %v59_v45, 0  ;;  %v270_v2 = vadd.s32 1, %v716_v62  ;;  %v377_v4 = vadd.s32 1, %v720_v1 }
  0x1d   :  { %v61_v59 = vsel %vm60_vm1, %v59_v45, 0 }
  0x1e   :  { %v63_v0 = vand.u32 31, %v61_v59  ;;  %vm271_vm4 = vcmp.gt.s32.totalorder %v270_v2, 0  ;;  %vm378_vm5 = vcmp.gt.s32.totalorder %v377_v4, 0  ;;  %v913_v11 = vshrl.u32 %v61_v59, 5 }
  0x1f   :  { %v272_v14 = vsel %vm271_vm4, %v270_v2, 0 }
  0x20   :  { %v907_v3 = vsub.s32 32, %v63_v0  ;;  %v78_v7 = vshll.u32 %v825_v6, %v63_v0  ;;  %v66_v13 = vshll.u32 %v827_v12, %v63_v0  ;;  %v69_v17 = vshll.u32 %v828_v15, %v63_v0 }
  0x21   :  { %v72_v20 = vshll.u32 %v829_v18, %v63_v0  ;;  %vm84_vm6 = vcmp.lt.s32.totalorder %v913_v11, 4  ;;  %vm81_vm7 = vcmp.lt.s32.totalorder %v913_v11, 1  ;;  %vm83_vm8 = vcmp.lt.s32.totalorder %v913_v11, 3 }
  0x22   :  { %v79_v9 = vshrl.u32 %v826_v8, %v907_v3  ;;  %v67_v16 = vshrl.u32 %v828_v15, %v907_v3  ;;  %v70_v19 = vshrl.u32 %v829_v18, %v907_v3  ;;  %vm82_vm9 = vcmp.lt.s32.totalorder %v913_v11, 2 }
  0x23   :  { %v958_v58 = vshrl.u32 %v272_v14, 5 }
  0x24   :  { %v922_v30 = vor.u32 %v67_v16, %v66_v13  ;;  %v924_v31 = vor.u32 %v70_v19, %v69_v17 }
  0x25   :  { %vm295_vm10 = vcmp.lt.s32.totalorder %v958_v58, 4  ;;  %vm292_vm12 = vcmp.lt.s32.totalorder %v958_v58, 1  ;;  %vm294_vm13 = vcmp.lt.s32.totalorder %v958_v58, 3  ;;  %vm293_vm0 = vcmp.lt.s32.totalorder %v958_v58, 2 }
  0x2f   :  { %656 = vperm.xlu0 %753, %v648_v22   ;;  %v73_v22 = vshrl.u32 %v830_v21, %v907_v3 }
  0x31   :  { %v926_v33 = vor.u32 %v73_v22, %v72_v20 }
  0x33   :  { %v93_v45 = vsel %vm81_vm7, %v924_v31, %v926_v33 }
  0xa2   :  { %v45_v23 = vpop.xlane.xlu0 %44 }
  0xa3   :  { %v46_v24 = vmax.f32 %v45_v23, 1e-24  ;;  %v75_v23 = vshll.u32 %v830_v21, %v63_v0 }
  0xa5   :  { %755 = vrsqrt.f32 %v46_v24  ;;  %v76_v24 = vshrl.u32 %v825_v6, %v907_v3 }
  0xaa   :  { %v886_v52 = vpop.permute.xlu0 %656 }
  0xab   :  { %vm658_vm2 = vcmp.eq.s32.totalorder %v875_v39, %v886_v52  ;;  %vm1193_vm3 = vcmp.eq.s32.totalorder %v882_v48, %v886_v52 }
  0xb2   :  { %v756_v34 = vpop.eup %755 }
  0xd9   :  { %v627_v35 = vpop.f32.mrf.mxu1 }
  0xda   :  { %v549_v25 = vpop.f32.mrf.mxu0  ;;  %v632_v40 = vmul.f32 %v756_v34, %v627_v35 }
  0xdb   :  { %v554_v26 = vmax.f32 %v549_v25, 1e-24  ;;  %v629_v43 = vpop.f32.mrf.mxu1  ;;  %v379_v25 = vsel %vm378_vm5, %v377_v4, 0 }
  0xdc   :  { %v551_v27 = vpop.f32.mrf.mxu0  ;;  %v633_v50 = vmul.f32 %v756_v34, %v629_v43  ;;  %v381_v32 = vand.u32 31, %v379_v25  ;;  %v77_v34 = vor.u32 %v76_v24, %v75_v23  ;;  %v965_v4 = vshrl.u32 %v379_v25, 5 }
  0xdd   :  { %757 = vrsqrt.f32 %v554_v26  ;;  %v555_v28 = vmax.f32 %v551_v27, 1e-24  ;;  %v80_v26 = vor.u32 %v79_v9, %v78_v7  ;;  %v274_v27 = vand.u32 31, %v272_v14 }
  0xde   :  { %v943_v43 = vsub.s32 32, %v381_v32  ;;  %v393_v56 = vshll.u32 %v830_v21, %v381_v32  ;;  %v396_v7 = vshll.u32 %v825_v6, %v381_v32  ;;  %v384_v14 = vshll.u32 %v827_v12, %v381_v32 }
  0xdf   :  { %759 = vrsqrt.f32 %v555_v28  ;;  %v57_v28 = vor.u32 8388608, %v56_v10  ;;  %v94_v35 = vsel %vm84_vm6, %v80_v26, 1326507024  ;;  %v933_v37 = vsub.s32 32, %v274_v27 }
  0xe0   :  { %v95_v46 = vsel %vm83_vm8, %v77_v34, %v94_v35  ;;  %v277_v59 = vshll.u32 %v827_v12, %v274_v27  ;;  %v394_v1 = vshrl.u32 %v825_v6, %v943_v43  ;;  %v283_v2 = vshll.u32 %v829_v18, %v274_v27 }
  0xe1   :  { %v287_v53 = vshrl.u32 %v825_v6, %v933_v37  ;;  %v281_v62 = vshrl.u32 %v829_v18, %v933_v37  ;;  %v290_v0 = vshrl.u32 %v826_v8, %v933_v37  ;;  %v397_v9 = vshrl.u32 %v826_v8, %v943_v43 }
  0xe2   :  { %v284_v10 = vshrl.u32 %v830_v21, %v933_v37  ;;  %v385_v16 = vshrl.u32 %v828_v15, %v943_v43  ;;  %v387_v17 = vshll.u32 %v828_v15, %v381_v32  ;;  %v388_v19 = vshrl.u32 %v829_v18, %v943_v43 }
  0xe3   :  { %v390_v20 = vshll.u32 %v829_v18, %v381_v32  ;;  %v391_v22 = vshrl.u32 %v830_v21, %v943_v43  ;;  %v398_v26 = vor.u32 %v397_v9, %v396_v7  ;;  %vm402_vm11 = vcmp.lt.s32.totalorder %v965_v4, 4 }
  0xe4   :  { %v386_v18 = vor.u32 %v385_v16, %v384_v14  ;;  %vm399_vm14 = vcmp.lt.s32.totalorder %v965_v4, 1  ;;  %vm401_vm15 = vcmp.lt.s32.totalorder %v965_v4, 3  ;;  %vm400_vm1 = vcmp.lt.s32.totalorder %v965_v4, 2 }
  0xe5   :  { %v392_v32 = vor.u32 %v391_v22, %v390_v20  ;;  %v65_v14 = vshrl.u32 %v827_v12, %v907_v3  ;;  %v86_v20 = vsel %vm84_vm6, %v926_v33, 2102212464  ;;  %v276_v22 = vshrl.u32 %v827_v12, %v933_v37 }
  0xea   :  { %v758_v42 = vpop.eup %757 }
  0xeb   :  { %v637_v44 = vrot.slane %v758_v42, %v636_v36  ;;  %v941_v42 = vshll.u32 %v57_v28, 8  ;;  %v285_v28 = vor.u32 %v284_v10, %v283_v2 }
  0xec   :  { %v760_v47 = vpop.eup %759 }
  0xed   :  { %v884_v49 = vmul.f32 %v637_v44, %v632_v40  ;;  %v641_v51 = vrot.slane %v760_v47, %v636_v36  ;;  %v260_v36 = vand.u32 2147483647, %v873_v38  ;;  %v939_v40 = vsel %vm81_vm7, %v922_v30, %v924_v31 }
  0xee   :  { %v90_v44 = vsel %vm84_vm6, %v77_v34, 920167782  ;;  %v367_v47 = vand.u32 2147483647, %v878_v41 }
  0xef   :  { %v889_v54 = vmul.f32 %v641_v51, %v633_v50  ;;  %v726_v55 = vclamps-f32 %v884_v49, 0.99999  ;;  %v267_v50 = vand.u32 8388607, %v260_v36  ;;  %v286_v51 = vshll.u32 %v830_v21, %v274_v27 }
  0xf0   :  { %v374_v8 = vand.u32 8388607, %v367_v47  ;;  %v389_v21 = vor.u32 %v388_v19, %v387_v17 }
  0xf1   :  { %v727_v57 = vclamps-f32 %v889_v54, 0.99999  ;;  %v660_v60 = vsel %vm658_vm2, %v726_v55, 0.0  ;;  %v288_v13 = vor.u32 %v287_v53, %v286_v51  ;;  %v268_v23 = vor.u32 8388608, %v267_v50 }
  0xf2   :  { %v91_v50 = vsel %vm83_vm8, %v926_v33, %v90_v44  ;;  %v96_v51 = vsel %vm82_vm9, %v93_v45, %v95_v46  ;;  %v375_v53 = vor.u32 8388608, %v374_v8  ;;  %v407_v45 = vsel %vm399_vm14, %v386_v18, %v389_v21 }
  0xf3   :  { %v661_v61 = vsel %vm1193_vm3, %v727_v57, 0.0  ;;  %v1018_v9 = vmul.u32.u64.low %v941_v42, %v96_v51  ;;  %v1019_v10 = vmul.u32.u64.high %v941_v42, %v96_v51, %v1018_v9  ;;  %v383_v33 = vshrl.u32 %v827_v12, %v943_v43 }
  0xf4   :  { %v662_v63 = vadd.f32 %v661_v61, %v660_v60  ;;  %v278_v60 = vshrl.u32 %v828_v15, %v933_v37  ;;  %v280_v61 = vshll.u32 %v828_v15, %v274_v27  ;;  %v301_v15 = vsel %vm295_vm10, %v288_v13, 920167782 }
  0xf5   :  { %v415_v7 = vshll.u32 %v375_v53, 8  ;;  %v404_v37 = vsel %vm402_vm11, %v392_v32, 2102212464  ;;  %v87_v51 = vsel %vm83_vm8, %v924_v31, %v86_v20  ;;  %v403_v43 = vsel %vm399_vm14, %v383_v33, %v386_v18 }
  0xf6   :  { %663 = vadd.xlane.f32.xlu1 %v662_v63  ;;  %v289_v63 = vshll.u32 %v825_v6, %v274_v27  ;;  %v395_v6 = vor.u32 %v394_v1, %v393_v56  ;;  %v279_v25 = vor.u32 %v278_v60, %v277_v59  ;;  %v282_v27 = vor.u32 %v281_v62, %v280_v61 }
  0xf7   :  { %v412_v56 = vsel %vm402_vm11, %v398_v26, 1326507024  ;;  %v302_v60 = vsel %vm294_vm13, %v285_v28, %v301_v15  ;;  %v92_v62 = vsel %vm82_vm9, %v939_v40, %v91_v50  ;;  %v297_v15 = vsel %vm295_vm10, %v285_v28, 2102212464 }
  0xf8   :  { %v291_v24 = vor.u32 %v290_v0, %v289_v63  ;;  %v408_v35 = vsel %vm402_vm11, %v395_v6, 920167782  ;;  %v300_v59 = vsel %vm292_vm12, %v279_v25, %v282_v27  ;;  %v304_v61 = vsel %vm292_vm12, %v282_v27, %v285_v28 }
  0xf9   :  { %v409_v46 = vsel %vm401_vm15, %v392_v32, %v408_v35  ;;  %v308_v63 = vshll.u32 %v268_v23, 8  ;;  %v411_v0 = vsel %vm399_vm14, %v389_v21, %v392_v32  ;;  %v413_v1 = vsel %vm401_vm15, %v395_v6, %v412_v56 }
  0xfa   :  { %v305_v34 = vsel %vm295_vm10, %v291_v24, 1326507024  ;;  %v303_v2 = vsel %vm293_vm0, %v300_v59, %v302_v60  ;;  %v410_v40 = vsel %vm400_vm1, %v407_v45, %v409_v46  ;;  %v414_v19 = vsel %vm400_vm1, %v411_v0, %v413_v1 }
  0xfb   :  { %v306_v44 = vsel %vm294_vm13, %v288_v13, %v305_v34  ;;  %v1028_v16 = vmul.u32.u64.low %v941_v42, %v92_v62  ;;  %v1029_v17 = vmul.u32.u64.high %v941_v42, %v92_v62, %v1028_v16  ;;  %v85_v50 = vsel %vm81_vm7, %v65_v14, %v922_v30 }
  0xfc   :  { %v307_v13 = vsel %vm293_vm0, %v304_v61, %v306_v44  ;;  %v1039_v23 = vmul.u32.u64.low %v308_v63, %v303_v2  ;;  %v1040_v24 = vmul.u32.u64.high %v308_v63, %v303_v2, %v1039_v23  ;;  %v296_v28 = vsel %vm292_vm12, %v276_v22, %v279_v25 }
  0xfd   :  { %v1043_v3 = vmul.u32.u64.low %v308_v63, %v307_v13  ;;  %v1044_v6 = vmul.u32.u64.high %v308_v63, %v307_v13, %v1043_v3  ;;  %v1046_v8 = vmul.u32.u64.low %v415_v7, %v410_v40  ;;  %v1047_v26 = vmul.u32.u64.high %v415_v7, %v410_v40, %v1046_v8 }
  0xfe   :  { %v1054_v34 = vmul.u32.u64.low %v415_v7, %v414_v19  ;;  %v1055_v35 = vmul.u32.u64.high %v415_v7, %v414_v19, %v1054_v34  ;;  %v298_v12 = vsel %vm294_vm13, %v282_v27, %v297_v15  ;;  %v405_v32 = vsel %vm401_vm15, %v389_v21, %v404_v37 }
  0xff   :  { %v88_v53 = vsel %vm82_vm9, %v85_v50, %v87_v51  ;;  %v107_v30 = vadd.s32 1, %v1029_v17  ;;  %vm106_vm4 = vc.u32 %v1019_v10, %v1028_v16  ;;  %v299_v31 = vsel %vm293_vm0, %v296_v28, %v298_v12 }
 0x100   :  { %v318_v25 = vadd.s32 1, %v1040_v24  ;;  %vm317_vm5 = vc.u32 %v1044_v6, %v1039_v23  ;;  %v406_v27 = vsel %vm400_vm1, %v403_v43, %v405_v32  ;;  %v425_v18 = vadd.s32 1, %v1047_v26 }
 0x101   :  { %v104_v11 = vmul.u32 %v941_v42, %v88_v53  ;;  %vm424_vm6 = vc.u32 %v1055_v35, %v1046_v8  ;;  %v108_v21 = vsel %vm106_vm4, %v107_v30, %v1029_v17  ;;  %v315_v56 = vmul.u32 %v308_v63, %v299_v31 }
 0x102   :  { %v319_v58 = vsel %vm317_vm5, %v318_v25, %v1040_v24  ;;  %v422_v59 = vmul.u32 %v415_v7, %v406_v27  ;;  %v426_v60 = vsel %vm424_vm6, %v425_v18, %v1047_v26  ;;  %v105_v53 = vadd.s32 %v1028_v16, %v1019_v10 }
 0x103   :  { %v109_v61 = vadd.s32 %v108_v21, %v104_v11  ;;  %v320_v44 = vadd.s32 %v319_v58, %v315_v56  ;;  %v316_v25 = vadd.s32 %v1039_v23, %v1044_v6  ;;  %v423_v11 = vadd.s32 %v1046_v8, %v1055_v35 }
 0x104   :  { %v427_v45 = vadd.s32 %v426_v60, %v422_v59  ;;  %vm51_vm10 = vcmp.lt.s32.totalorder %v869_v29, 0  ;;  %vm262_vm11 = vcmp.lt.s32.totalorder %v873_v38, 0  ;;  %vm369_vm12 = vcmp.lt.s32.totalorder %v878_v41, 0 }
 0x105   :  { %v110_v4 = vadd.s32 536870912, %v109_v61  ;;  %v321_v46 = vadd.s32 536870912, %v320_v44  ;;  %vm1112_vm13 = vcmp.le.f32.partialorder %v49_v5, 0.7853982  ;;  %vm1120_vm14 = vcmp.le.f32.partialorder %v260_v36, 0.7853982 }
 0x106   :  { %v428_v62 = vadd.s32 536870912, %v427_v45  ;;  %vm1128_vm15 = vcmp.le.f32.partialorder %v367_v47, 0.7853982  ;;  %vm141_vm3 = vweird.f32 %v869_v29 }
 0x107   :  { %v1092_v0 = vshrl.u32 %v110_v4, 30  ;;  %v1094_v42 = vshrl.u32 %v321_v46, 30 }
 0x108   :  { %v1096_v1 = vshrl.u32 %v428_v62, 30 }
 0x109   :  { %v112_v2 = vshll.u32 %v1092_v0, 30  ;;  %v323_v63 = vshll.u32 %v1094_v42, 30 }
 0x10a   :  { %v430_v7 = vshll.u32 %v1096_v1, 30  ;;  %v453_v47 = vsub.s32 4, %v1096_v1 }
 0x10b   :  { %v113_v9 = vsub.s32 %v109_v61, %v112_v2  ;;  %v324_v13 = vsub.s32 %v320_v44, %v323_v63 }
 0x10c   :  { %v431_v40 = vsub.s32 %v427_v45, %v430_v7 }
 0x10d   :  { %v115_v14 = vsub.s32 0, %v113_v9  ;;  %v326_v17 = vsub.s32 0, %v324_v13 }
 0x10e   :  { %v433_v19 = vsub.s32 0, %v431_v40 }
 0x10f   :  { %v709_v20 = vmin.u32 %v115_v14, %v113_v9  ;;  %v717_v22 = vmin.u32 %v326_v17, %v324_v13 }
 0x110   :  { %v721_v24 = vmin.u32 %v433_v19, %v431_v40 }
 0x111   :  { %v117_v3 = vclz %v709_v20  ;;  %v328_v26 = vclz %v717_v22 }
 0x112   :  { %v435_v15 = vclz %v721_v24 }
 0x113   :  { %v710_v33 = vadd.s32 4294967294, %v117_v3  ;;  %v718_v34 = vadd.s32 4294967294, %v328_v26 }
 0x114   :  { %v722_v37 = vadd.s32 4294967294, %v435_v15 }
 0x115   :  { %vm711_vm7 = vcmp.lt.s32.totalorder %v710_v33, 0  ;;  %vm719_vm8 = vcmp.lt.s32.totalorder %v718_v34, 0 }
 0x116   :  { %vm723_vm9 = vcmp.lt.s32.totalorder %v722_v37, 0  ;;  %v120_v50 = vsel %vm711_vm7, 0, %v710_v33  ;;  %v331_v51 = vsel %vm719_vm8, 0, %v718_v34 }
 0x117   :  { %v438_v28 = vsel %vm723_vm9, 0, %v722_v37  ;;  %v125_v12 = vsub.s32 4294967266, %v120_v50  ;;  %v336_v43 = vsub.s32 4294967266, %v331_v51  ;;  %v121_v30 = vsub.s32 32, %v120_v50 }
 0x118   :  { %v443_v32 = vsub.s32 4294967266, %v438_v28  ;;  %v332_v27 = vsub.s32 32, %v331_v51  ;;  %v439_v21 = vsub.s32 32, %v438_v28  ;;  %v122_v58 = vshll.u32 %v113_v9, %v120_v50 }
 0x119   :  { %v126_v31 = vadd.s32 127, %v125_v12  ;;  %v337_v18 = vadd.s32 127, %v336_v43  ;;  %v123_v59 = vshrl.u32 %v105_v53, %v121_v30  ;;  %v333_v61 = vshll.u32 %v324_v13, %v331_v51 }
 0x11a   :  { %v444_v56 = vadd.s32 127, %v443_v32  ;;  %v334_v44 = vshrl.u32 %v316_v25, %v332_v27  ;;  %v440_v4 = vshll.u32 %v431_v40, %v438_v28  ;;  %v441_v10 = vshrl.u32 %v423_v11, %v439_v21 }
 0x11b   :  { %v127_v60 = vshll.u32 %v126_v31, 23  ;;  %v338_v45 = vshll.u32 %v337_v18, 23  ;;  %v124_v46 = vor.u32 %v123_v59, %v122_v58  ;;  %v135_v51 = vsub.s32 4, %v1092_v0 }
 0x11c   :  { %v445_v16 = vshll.u32 %v444_v56, 23  ;;  %v335_v2 = vor.u32 %v334_v44, %v333_v61  ;;  %v442_v6 = vor.u32 %v441_v10, %v440_v4  ;;  %v346_v28 = vsub.s32 4, %v1094_v42 }
 0x11d   :  { %v128_v62 = vor.u32 4788187, %v127_v60  ;;  %v339_v23 = vor.u32 4788187, %v338_v45  ;;  %v131_v14 = vcvt.s32.f32 %v124_v46  ;;  %v454_v43 = vsel %vm369_vm12, %v453_v47, %v1096_v1 }
 0x11e   :  { %v446_v63 = vor.u32 4788187, %v445_v16  ;;  %v342_v35 = vcvt.s32.f32 %v335_v2  ;;  %v449_v9 = vcvt.s32.f32 %v442_v6  ;;  %v136_v32 = vsel %vm51_vm10, %v135_v51, %v1092_v0 }
 0x11f   :  { %v129_v7 = vand.u32 2147483647, %v128_v62  ;;  %v340_v8 = vand.u32 2147483647, %v339_v23  ;;  %v347_v30 = vsel %vm262_vm11, %v346_v28, %v1094_v42  ;;  %v456_v27 = vsel %vm1128_vm15, 0, %v454_v43 }
 0x120   :  { %v447_v17 = vand.u32 2147483647, %v446_v63  ;;  %v138_v1 = vsel %vm1112_vm13, 0, %v136_v32  ;;  %v349_v11 = vsel %vm1120_vm14, 0, %v347_v30  ;;  %v460_v59 = vand.u32 3, %v456_v27 }
 0x121   :  { %v132_v19 = vmul.f32 %v131_v14, %v129_v7  ;;  %v343_v20 = vmul.f32 %v342_v35, %v340_v8  ;;  %v245_v56 = vadd.s32 3, %v138_v1  ;;  %v353_v42 = vand.u32 3, %v349_v11 }
 0x122   :  { %v450_v13 = vmul.f32 %v449_v9, %v447_v17  ;;  %v142_v44 = vand.u32 3, %v138_v1  ;;  %vm462_vm0 = vcmp.eq.s32.totalorder %v460_v59, 0  ;;  %vm465_vm1 = vcmp.eq.s32.totalorder %v460_v59, 2 }
 0x123   :  { %v133_v22 = vxor.u32 2147483648, %v132_v19  ;;  %v344_v40 = vxor.u32 2147483648, %v343_v20  ;;  %v246_v45 = vand.u32 3, %v245_v56  ;;  %vm355_vm4 = vcmp.eq.s32.totalorder %v353_v42, 0 }
 0x124   :  { %v451_v24 = vxor.u32 2147483648, %v450_v13  ;;  %vm358_vm5 = vcmp.eq.s32.totalorder %v353_v42, 2  ;;  %vm144_vm6 = vcmp.eq.s32.totalorder %v142_v44, 0  ;;  %vm147_vm7 = vcmp.eq.s32.totalorder %v142_v44, 2 }
 0x125   :  { %v134_v26 = vsel %vm51_vm10, %v133_v22, %v132_v19  ;;  %v345_v33 = vsel %vm262_vm11, %v344_v40, %v343_v20  ;;  %vm461_vm8 = vcmp.lt.s32.totalorder %v460_v59, 2  ;;  %vm248_vm9 = vcmp.eq.s32.totalorder %v246_v45, 0 }
 0x126   :  { %v452_v5 = vsel %vm369_vm12, %v451_v24, %v450_v13  ;;  %v137_v37 = vsel %vm1112_vm13, %v869_v29, %v134_v26  ;;  %v348_v36 = vsel %vm1120_vm14, %v873_v38, %v345_v33  ;;  %vm251_vm10 = vcmp.eq.s32.totalorder %v246_v45, 2 }
 0x127   :  { %v455_v50 = vsel %vm1128_vm15, %v878_v41, %v452_v5  ;;  %761 = vcosq.f32 %v137_v37  ;;  %vm354_vm11 = vcmp.lt.s32.totalorder %v353_v42, 2  ;;  %vm143_vm12 = vcmp.lt.s32.totalorder %v142_v44, 2 }
 0x128   :  { %763 = vcosq.f32 %v348_v36  ;;  %vm459_vm13 = vweird.f32 %v878_v41  ;;  %vm247_vm14 = vcmp.lt.s32.totalorder %v246_v45, 2  ;;  %vm352_vm15 = vweird.f32 %v873_v38 }
 0x129   :  { %765 = vcosq.f32 %v455_v50 }
 0x12a   :  { %767 = vsinq.f32 %v455_v50 }
 0x12b   :  { %769 = vsinq.f32 %v348_v36 }
 0x12c   :  { %771 = vsinq.f32 %v137_v37 }
 0x134   :  { %v762_v31 = vpop.eup %761 }
 0x135   :  { %v764_v18 = vpop.eup %763  ;;  %v148_v2 = vxor.u32 2147483648, %v762_v31 }
 0x136   :  { %v766_v0 = vpop.eup %765  ;;  %v359_v46 = vxor.u32 2147483648, %v764_v18 }
 0x137   :  { %v768_v58 = vpop.eup %767  ;;  %v466_v10 = vxor.u32 2147483648, %v766_v0 }
 0x138   :  { %v770_v60 = vpop.eup %769  ;;  %v463_v4 = vxor.u32 2147483648, %v768_v58 }
 0x139   :  { %v772_v61 = vpop.eup %771  ;;  %v356_v16 = vxor.u32 2147483648, %v770_v60  ;;  %v467_v6 = vsel %vm465_vm1, %v466_v10, %v768_v58  ;;  %v360_v7 = vsel %vm358_vm5, %v359_v46, %v770_v60  ;;  %vm259_vm1 = vcmp.ge.f32.partialorder %v873_v38, 3.1415927 }
 0x13a   :  { %v145_v62 = vxor.u32 2147483648, %v772_v61  ;;  %v464_v23 = vsel %vm462_vm0, %v766_v0, %v463_v4  ;;  %v149_v8 = vsel %vm147_vm7, %v148_v2, %v772_v61  ;;  %v253_v17 = vsel %vm251_vm10, %v148_v2, %v772_v61 }
 0x13b   :  { %v357_v63 = vsel %vm355_vm4, %v764_v18, %v356_v16  ;;  %v468_v9 = vsel %vm461_vm8, %v464_v23, %v467_v6  ;;  %vm366_vm0 = vcmp.ge.f32.partialorder %v878_v41, 3.1415927  ;;  %vm365_vm4 = vcmp.le.f32.partialorder %v878_v41, 0.0 }
 0x13c   :  { %v146_v14 = vsel %vm144_vm6, %v762_v31, %v145_v62  ;;  %v250_v35 = vsel %vm248_vm9, %v762_v31, %v145_v62  ;;  %v361_v19 = vsel %vm354_vm11, %v357_v63, %v360_v7  ;;  %v469_v22 = vsel %vm459_vm13, nan, %v468_v9 }
 0x13d   :  { %v150_v20 = vsel %vm143_vm12, %v146_v14, %v149_v8  ;;  %v254_v13 = vsel %vm247_vm14, %v250_v35, %v253_v17  ;;  %v362_v24 = vsel %vm352_vm15, nan, %v361_v19  ;;  %v470_v33 = vsel %vm366_vm0, -inf, %v469_v22 }
 0x13e   :  { %v151_v3 = vsel %vm141_vm3, nan, %v150_v20  ;;  %v255_v15 = vsel %vm141_vm3, nan, %v254_v13  ;;  %vm258_vm6 = vcmp.le.f32.partialorder %v873_v38, 0.0  ;;  %v363_v29 = vsel %vm259_vm1, -inf, %v362_v24 }
 0x13f   :  { %v471_v50 = vsel %vm365_vm4, inf, %v470_v33  ;;  %v364_v51 = vsel %vm258_vm6, inf, %v363_v29  ;;  %vm1200_vm3 = vcmp.eq.s32.totalorder %v882_v48, %v886_v52 }
 0x17f   :  { %v1146_v12 = vpop.xlane.xlu1 %663 }
 0x180   :  { %v665_v53 = vmul.f32 %v1146_v12, %v1146_v12  ;;  %v675_v36 = vmul.f32 %v1146_v12, %v151_v3  ;;  %vm679_vm8 = vcmp.gt.f32.partialorder %v1146_v12, %v471_v50  ;;  %vm678_vm9 = vcmp.lt.f32.partialorder %v1146_v12, %v364_v51 }
 0x182   :  { %v666_v25 = vsub.f32 1.0, %v665_v53 }
 0x184   :  { %v667_v21 = vmax.f32 %v666_v25, 0.0 }
 0x186   :  { %773 = vrsqrt.f32 %v667_v21  ;;  %vm670_vm5 = vcmp.eq.f32.partialorder %v667_v21, inf  ;;  %v673_v34 = vand.u32 2147483648, %v667_v21  ;;  %vm672_vm7 = vcmp.eq.f32.partialorder %v667_v21, 0.0 }
 0x193   :  { %v774_v40 = vpop.eup %773 }
 0x194   :  { %v669_v26 = vmul.f32 %v774_v40, %v667_v21 }
 0x196   :  { %v671_v5 = vsel %vm670_vm5, %v667_v21, %v669_v26 }
 0x197   :  { %v674_v37 = vsel %vm672_vm7, %v673_v34, %v671_v5 }
 0x198   :  { %v676_v47 = vmul.f32 %v674_v37, %v255_v15 }
 0x19a   :  { %v677_v28 = vsub.f32 %v675_v36, %v676_v47 }
 0x19c   :  { %v680_v41 = vsel %vm679_vm8, 1.0, %v677_v28 }
 0x19d   :  { %v681_v43 = vsel %vm678_vm9, -1.0, %v680_v41 }
 0x19e   :  { %684 = vperm.xlu1 %754, %v681_v43  }
 0x219   :  { %v685_v38 = vpop.permute.xlu1 %684 }
 0x21a   :  { %v687_v32 = vsel %vm658_vm2, %v685_v38, %v726_v55  ;;  %v688_v53 = vsel %vm1200_vm3, %v685_v38, %v727_v57 }
 0x21b   :  { %v689_v30 = vmul.f32 64.0, %v687_v32  ;;  %v690_v12 = vmul.f32 64.0, %v688_v53 }
 0x21d   :  { %691 = vst [vmem:[#allocation5] sm:$0xff] %v689_v30  ;;  %692 = vst [vmem:[#allocation5 + $0x8] sm:$0xff] %v690_v12 }
 0x21e   :  { %806 = shalt.err (!%p803_p9)
}
 0x21f   :  { %702 = dma.vmem_to_hbm [thread:$0]  %s700_s1, 256, %s1192_s4, [#allocation4]  }
 0x220   :  { %817 = dma.done.wait [#allocation4], 256  }
 0x221   :  { %818 = vsyncadd [#allocation4], 4294967040 }
 0x222   :  { %706 = vsyncpa [#allocation3], 1 }
 0x223   :  { %707 = vsyncpa [#allocation4], 1 }

</bundles_post_ra>
